<compile_context>
chip_gen: v6e
topology: v6e:2x2x1
jax: 0.10.0
libtpu: 0.0.40
codegen_flags: <defaults>
</compile_context>

<pallas_src>
import jax
import jax.numpy as jnp
from jax.experimental import pallas as pl
from jax.experimental.pallas import tpu as pltpu


def _round_up(x, m):
    return ((x + m - 1) // m) * m


def _pick_tiles(n):
    """Square (tm, tk) tiles; tk lane-aligned to 128, n padded to a tile multiple."""
    if n <= 512:
        t = _round_up(n, 128)
    else:
        t = 512
    n_pad = _round_up(n, t)
    return n_pad, t, t


# -----------------------------------------------------------------------------
# Kernel 1: feature transform  XW = X @ W  (row-tiled, bf16 output)
# -----------------------------------------------------------------------------
def _xw_kernel(x_ref, w_ref, o_ref):
    o_ref[...] = jnp.dot(
        x_ref[...], w_ref[...], preferred_element_type=jnp.float32
    ).astype(o_ref.dtype)


def _xw_matmul(x_pad, w_pad, tm):
    n_pad, f_in_pad = x_pad.shape
    f_out_pad = w_pad.shape[1]
    return pl.pallas_call(
        _xw_kernel,
        out_shape=jax.ShapeDtypeStruct((n_pad, f_out_pad), jnp.bfloat16),
        grid_spec=pltpu.PrefetchScalarGridSpec(
            num_scalar_prefetch=0,
            grid=(n_pad // tm,),
            in_specs=[
                pl.BlockSpec((tm, f_in_pad), lambda i: (i, 0)),
                pl.BlockSpec((f_in_pad, f_out_pad), lambda i: (0, 0)),
            ],
            out_specs=pl.BlockSpec((tm, f_out_pad), lambda i: (i, 0)),
        ),
        compiler_params=pltpu.CompilerParams(
            dimension_semantics=("parallel",),
            vmem_limit_bytes=32 * 1024 * 1024,
        ),
    )(x_pad, w_pad)


# -----------------------------------------------------------------------------
# Kernel 2: tiled aggregation  out = relu(A_hat @ XW + b)
#   grid = (row tiles, k tiles); k is the reduction axis (last, 'arbitrary'),
#   f32 accumulator in VMEM scratch, bias+ReLU fused into the finalize step.
# -----------------------------------------------------------------------------
def _agg_kernel(a_ref, xw_ref, b_ref, o_ref, acc_ref):
    k = pl.program_id(1)

    @pl.when(k == 0)
    def _():
        acc_ref[...] = jnp.zeros_like(acc_ref)

    acc_ref[...] += jnp.dot(
        a_ref[...], xw_ref[...], preferred_element_type=jnp.float32
    )

    @pl.when(k == pl.num_programs(1) - 1)
    def _():
        o_ref[...] = jnp.maximum(acc_ref[...] + b_ref[...], 0.0).astype(o_ref.dtype)


def _aggregate(a_hat_bf16, xw_bf16, b_pad, tm, tk):
    n_pad = a_hat_bf16.shape[0]
    f_out_pad = xw_bf16.shape[1]
    return pl.pallas_call(
        _agg_kernel,
        out_shape=jax.ShapeDtypeStruct((n_pad, f_out_pad), jnp.float32),
        grid_spec=pltpu.PrefetchScalarGridSpec(
            num_scalar_prefetch=0,
            grid=(n_pad // tm, n_pad // tk),
            in_specs=[
                pl.BlockSpec((tm, tk), lambda i, k: (i, k)),
                pl.BlockSpec((tk, f_out_pad), lambda i, k: (k, 0)),
                pl.BlockSpec((1, f_out_pad), lambda i, k: (0, 0)),
            ],
            out_specs=pl.BlockSpec((tm, f_out_pad), lambda i, k: (i, 0)),
            scratch_shapes=[pltpu.VMEM((tm, f_out_pad), jnp.float32)],
        ),
        compiler_params=pltpu.CompilerParams(
            dimension_semantics=("parallel", "arbitrary"),
            vmem_limit_bytes=32 * 1024 * 1024,
        ),
    )(a_hat_bf16, xw_bf16, b_pad)


# -----------------------------------------------------------------------------
# Layer wrapper: pad -> XW kernel -> aggregation kernel -> slice
# -----------------------------------------------------------------------------
def gcn_layer(a_hat_pad_bf16, x, w, b, *, tm, tk, n):
    n_pad = a_hat_pad_bf16.shape[0]
    f_in, f_out = w.shape
    f_in_pad = _round_up(f_in, 128)
    f_out_pad = _round_up(f_out, 128)

    x_pad = jnp.zeros((n_pad, f_in_pad), jnp.float32).at[: x.shape[0], :f_in].set(x)
    w_pad = jnp.zeros((f_in_pad, f_out_pad), jnp.float32).at[:f_in, :f_out].set(w)
    b_pad = jnp.zeros((1, f_out_pad), jnp.float32).at[0, :f_out].set(b)

    xw = _xw_matmul(x_pad, w_pad, tm)              # bf16 (N_pad, F_out_pad)
    out = _aggregate(a_hat_pad_bf16, xw, b_pad, tm, tk)
    return out[:n, :f_out]


def build_normalized_adjacency(edge_index, num_nodes):
    """Dense A_hat = D^{-1/2}(A + I)D^{-1/2}  (glue; plain JAX).

    Matches PyG gcn_norm semantics: duplicate edges scatter-add; self loops
    are only added for nodes that do not already have one.
    """
    src, dst = edge_index[0], edge_index[1]
    a = jnp.zeros((num_nodes, num_nodes), jnp.float32)
    a = a.at[dst, src].add(1.0)                                  # scatter-add
    diag = jnp.diagonal(a)
    a = a + jnp.diag(jnp.where(diag > 0.0, 0.0, 1.0))            # remaining self loops
    deg = jnp.sum(a, axis=1)
    d_inv_sqrt = jnp.where(deg > 0, 1.0 / jnp.sqrt(deg), 0.0)
    return d_inv_sqrt[:, None] * a * d_inv_sqrt[None, :]


class GraceModel:
    """JAX/Pallas port of the forward pass of the PyTorch `Model`."""

    def __init__(self, input_dim, output_dim, projection_hidden_dim, tau=0.5, seed=0):
        self.tau = tau
        k = jax.random.PRNGKey(seed)
        k1, k2, k3, k4, k5, k6 = jax.random.split(k, 6)
        hid = output_dim * 2
        # GCNConv weights stored as (F_in, F_out); biases as (F_out,)
        self.w1 = 0.1 * jax.random.normal(k1, (input_dim, hid), jnp.float32)
        self.b1 = 0.1 * jax.random.normal(k2, (hid,), jnp.float32)
        self.w2 = 0.1 * jax.random.normal(k3, (hid, output_dim), jnp.float32)
        self.b2 = 0.1 * jax.random.normal(k4, (output_dim,), jnp.float32)
        # Projection head params (not used in forward, kept for parity)
        self.fc1_w = 0.1 * jax.random.normal(k5, (output_dim, projection_hidden_dim), jnp.float32)
        self.fc2_w = 0.1 * jax.random.normal(k6, (projection_hidden_dim, output_dim), jnp.float32)
        # TODO(synk): projection / loss / semi_loss / sim paths not exercised by forward().

    def forward(self, x, edge_index):
        n = x.shape[0]
        n_pad, tm, tk = _pick_tiles(n)
        a_hat = build_normalized_adjacency(edge_index, n)
        # Build/pad/cast A_hat once (bf16) and reuse across both layers.
        a_pad = (
            jnp.zeros((n_pad, n_pad), jnp.float32).at[:n, :n].set(a_hat)
        ).astype(jnp.bfloat16)
        h = gcn_layer(a_pad, x, self.w1, self.b1, tm=tm, tk=tk, n=n)   # conv1 + relu
        h = gcn_layer(a_pad, h, self.w2, self.b2, tm=tm, tk=tk, n=n)   # conv2 + relu
        return h


def _reference_forward(model, x, edge_index):
    """Plain-JAX reference replicating the kernel's bf16 operand casts."""
    a = build_normalized_adjacency(edge_index, x.shape[0]).astype(jnp.bfloat16)

    def layer(a_bf16, xin, w, b):
        xw = jnp.dot(xin, w, preferred_element_type=jnp.float32).astype(jnp.bfloat16)
        agg = jnp.dot(a_bf16, xw, preferred_element_type=jnp.float32)
        return jnp.maximum(agg + b, 0.0)

    h = layer(a, x, model.w1, model.b1)
    h = layer(a, h, model.w2, model.b2)
    return h


if __name__ == "__main__":
    # Small shapes: 8 nodes, 16 input features, 8 output features, 32 proj hidden
    N, INPUT_DIM, OUTPUT_DIM, PROJ_HIDDEN = 8, 16, 8, 32

    key = jax.random.PRNGKey(0)
    kx, ke = jax.random.split(key)
    x = jax.random.normal(kx, (N, INPUT_DIM), jnp.float32)
    # Random edge list: [2, E] int32 (may contain duplicates / self loops)
    E = 16
    src = jax.random.randint(ke, (E,), 0, N, dtype=jnp.int32)
    dst = jnp.roll(src, 3)
    edge_index = jnp.stack([src, dst], axis=0)

    model = GraceModel(INPUT_DIM, OUTPUT_DIM, PROJ_HIDDEN, tau=0.5, seed=0)

    out = model.forward(x, edge_index)
    out = jax.block_until_ready(out)

    ref = _reference_forward(model, x, edge_index)
    assert out.shape == (N, OUTPUT_DIM)
    assert jnp.allclose(out, ref, atol=1e-3, rtol=1e-3), (
        float(jnp.max(jnp.abs(out - ref)))
    )

    print("KERNEL_OK")
</pallas_src>

<mosaic_0001>
module attributes {stable_mosaic.version = 11 : i64} {
  func.func @_xw_kernel(%arg0: i32, %arg1: memref<128x128xf32, #tpu.memory_space<vmem>>, %arg2: memref<128x128xf32, #tpu.memory_space<vmem>>, %arg3: memref<128x128xbf16, #tpu.memory_space<vmem>>) attributes {dimension_semantics = [#tpu.dimension_semantics<parallel>], iteration_bounds = array<i64: 1>, scalar_prefetch = 0 : i64, scratch_operands = 0 : i64, tpu.core_type = #tpu.core_type<tc>, window_params = [{transform_indices = @transform_0, window_bounds = array<i64: 128, 128>}, {pipeline_mode = #tpu.pipeline_mode<synchronous>, transform_indices = @transform_1, window_bounds = array<i64: 128, 128>}, {transform_indices = @transform_2, window_bounds = array<i64: 128, 128>}]} {
    %c0 = arith.constant 0 : index
    %c0_0 = arith.constant 0 : index
    %0 = vector.load %arg1[%c0, %c0_0] : memref<128x128xf32, #tpu.memory_space<vmem>>, vector<128x128xf32>
    %c0_1 = arith.constant 0 : index
    %c0_2 = arith.constant 0 : index
    %1 = vector.load %arg2[%c0_1, %c0_2] : memref<128x128xf32, #tpu.memory_space<vmem>>, vector<128x128xf32>
    %cst = arith.constant dense<0.000000e+00> : vector<128x128xf32>
    %2 = tpu.matmul %0, %1, %cst {dimension_numbers = #tpu.dot_dimension_numbers<[1], [0], [0], [1], [0, 0, 1, 1], [], []>} : vector<128x128xf32>, vector<128x128xf32>, vector<128x128xf32> -> vector<128x128xf32>
    %3 = arith.truncf %2 : vector<128x128xf32> to vector<128x128xbf16>
    %c0_3 = arith.constant 0 : index
    %c0_4 = arith.constant 0 : index
    %4 = vector.load %arg3[%c0_3, %c0_4] : memref<128x128xbf16, #tpu.memory_space<vmem>>, vector<128x128xbf16>
    tpu.vector_store %arg3[%c0_3, %c0_4], %3 {strides = array<i32>} : memref<128x128xbf16, #tpu.memory_space<vmem>>, vector<128x128xbf16>,
    return
  }
  func.func @transform_0(%arg0: i32) -> (i32, i32) {
    %c0_i32 = arith.constant 0 : i32
    %c0_i32_0 = arith.constant 0 : i32
    return %arg0, %c0_i32 : i32, i32
  }
  func.func @transform_1(%arg0: i32) -> (i32, i32) {
    %c0_i32 = arith.constant 0 : i32
    %c0_i32_0 = arith.constant 0 : i32
    %c0_i32_1 = arith.constant 0 : i32
    return %c0_i32, %c0_i32_0 : i32, i32
  }
  func.func @transform_2(%arg0: i32) -> (i32, i32) {
    %c0_i32 = arith.constant 0 : i32
    %c0_i32_0 = arith.constant 0 : i32
    return %arg0, %c0_i32 : i32, i32
  }
}

</mosaic_0001>

<bundles_post_ra>
// kernel: tpu_custom_call.1
= control target key start
LH: loop header
LB: loop body
LE: loop exit
PB: predicated region body
PF: predicated region fallthrough
CT: control target
= control target key end

     0   :  { %7 = vsyncpa [#allocation3], 0  ;;  %s618_s0 = inlined_call_operand.hbm [shape: f32[128,128], index: 0, kind: input, shape index: {}]   ;;  %s619_s1 = inlined_call_operand.hbm [shape: f32[128,128], index: 1, kind: input, shape index: {}]   ;;  %s620_s2 = inlined_call_operand.hbm [shape: bf16[128,128], index: 2, kind: output, shape index: {}]  }
   0x1   :  { %8 = vsyncpa [#allocation6], 0 }
   0x2   :  { %9 = vsyncpa [#allocation4], 0  ;;  %s587_s9 = smov [#allocation2]  }
   0x3   :  { %s15_s10 = sshll.u32 %s587_s9, 4  ;;  %s16_s10 = int_to_ptr.vmem [resolvable:$true] %s15_s10 }
   0x4   :  { %s529_s11 = scalar_lea.vmem %s16_s10, 2048  ;;  %p534_p1 = scmp.lt.s32.totalorder %s16_s10, %s16_s10 }
   0x5   :  { %p530_p0 = scmp.ne.s32.totalorder %s16_s10, %s529_s11  ;;  %p535_p2 = scmp.lt.s32.totalorder %s529_s11, %s529_s11 }
   0x7   :  { %p536_p3 = por %p535_p2, %p534_p1 }
   0x9   :  { %p537_p4 = pnand %p536_p3, %p530_p0 }
   0xb   :  { %540 = shalt.err (!%p537_p4)
}
   0xc   :  { %s588_s12 = smov 128   ;;  %s589_s13 = smov 8  }
   0xd   :  { %21 = dma.hbm_to_vmem [thread:$0]  %s618_s0, 2048, %s16_s10, [#allocation3], %s588_s12, %s588_s12, %s589_s13  }
   0xe   :  { %s590_s16 = smov [#allocation5]  }
   0xf   :  { %s27_s17 = sshll.u32 %s590_s16, 4  ;;  %s28_s17 = int_to_ptr.vmem [resolvable:$true] %s27_s17 }
  0x10   :  { %s549_s18 = scalar_lea.vmem %s28_s17, 2048  ;;  %p554_p6 = scmp.lt.s32.totalorder %s28_s17, %s28_s17 }
  0x11   :  { %p550_p5 = scmp.ne.s32.totalorder %s28_s17, %s549_s18  ;;  %p555_p7 = scmp.lt.s32.totalorder %s549_s18, %s549_s18 }
  0x13   :  { %p556_p8 = por %p555_p7, %p554_p6 }
  0x15   :  { %p557_p9 = pnand %p556_p8, %p550_p5 }
  0x17   :  { %560 = shalt.err (!%p557_p9)
}
  0x18   :  { %33 = dma.hbm_to_vmem [thread:$0]  %s619_s1, 2048, %s28_s17, [#allocation6], %s588_s12, %s588_s12, %s589_s13  }
  0x19   :  { %581 = dma.done.wait [#allocation3], 2048  }
  0x1a   :  { %582 = vsyncadd [#allocation3], 4294965248 }
  0x1b   :  { %583 = dma.done.wait [#allocation6], 2048  }
  0x1c   :  { %584 = vsyncadd [#allocation6], 4294965248  ;;  %v71_v0 = vld [vmem:[#allocation5 + $0x78] sm:$0xff]  ;;  %v70_v1 = vld [vmem:[#allocation5 + $0x70] sm:$0xff]  ;;  %s591_s0 = smov [#allocation7]  }
  0x1d   :  { %426 = vmatprep.subr.mxu0 %v71_v0  ;;  %482 = vmatprep.subr.mxu1 %v71_v0  ;;  %v69_v2 = vld [vmem:[#allocation5 + $0x68] sm:$0xff]  ;;  %v68_v3 = vld [vmem:[#allocation5 + $0x60] sm:$0xff]  ;;  %v67_v4 = vld [vmem:[#allocation5 + $0x58] sm:$0xff]  ;;  %s302_s1 = sshll.u32 %s591_s0, 4  ;;  %s303_s1 = int_to_ptr.vmem [resolvable:$true] %s302_s1 }
  0x1e   :  { %427 = vmatpush3.msra.mxu0 %v71_v0  ;;  %498 = vmatpush3.msra.mxu1 %v71_v0  ;;  %v66_v5 = vld [vmem:[#allocation5 + $0x50] sm:$0xff]  ;;  %v65_v6 = vld [vmem:[#allocation5 + $0x48] sm:$0xff]  ;;  %v64_v7 = vld [vmem:[#allocation5 + $0x40] sm:$0xff]  ;;  %s561_s21 = scalar_lea.vmem %s303_s1, 1024  ;;  %p566_p11 = scmp.lt.s32.totalorder %s303_s1, %s303_s1 }
  0x1f   :  { %428 = vmatprep.subr.mxu0 %v70_v1  ;;  %483 = vmatprep.subr.mxu1 %v70_v1  ;;  %v63_v8 = vld [vmem:[#allocation5 + $0x38] sm:$0xff]  ;;  %v62_v9 = vld [vmem:[#allocation5 + $0x30] sm:$0xff]  ;;  %v61_v10 = vld [vmem:[#allocation5 + $0x28] sm:$0xff]  ;;  %p562_p10 = scmp.ne.s32.totalorder %s303_s1, %s561_s21  ;;  %p567_p12 = scmp.lt.s32.totalorder %s561_s21, %s561_s21 }
  0x20   :  { %429 = vmatpush3.msra.mxu0 %v70_v1  ;;  %499 = vmatpush3.msra.mxu1 %v70_v1  ;;  %v60_v11 = vld [vmem:[#allocation5 + $0x20] sm:$0xff]  ;;  %v59_v12 = vld [vmem:[#allocation5 + $0x18] sm:$0xff]  ;;  %v58_v13 = vld [vmem:[#allocation5 + $0x10] sm:$0xff] }
  0x21   :  { %430 = vmatprep.subr.mxu0 %v69_v2  ;;  %484 = vmatprep.subr.mxu1 %v69_v2  ;;  %v57_v14 = vld [vmem:[#allocation5 + $0x8] sm:$0xff]  ;;  %v56_v15 = vld [vmem:[#allocation5] sm:$0xff]  ;;  %v42_v20 = vld [vmem:[#allocation2 + $0x10] sm:$0xff]  ;;  %p568_p13 = por %p567_p12, %p566_p11 }
  0x22   :  { %431 = vmatpush3.msra.mxu0 %v69_v2  ;;  %500 = vmatpush3.msra.mxu1 %v69_v2  ;;  %v40_v16 = vld [vmem:[#allocation2] sm:$0xff]  ;;  %v41_v18 = vld [vmem:[#allocation2 + $0x8] sm:$0xff]  ;;  %v50_v21 = vld [vmem:[#allocation2 + $0x50] sm:$0xff] }
  0x23   :  { %432 = vmatprep.subr.mxu0 %v68_v3  ;;  %485 = vmatprep.subr.mxu1 %v68_v3  ;;  %v48_v17 = vld [vmem:[#allocation2 + $0x40] sm:$0xff]  ;;  %v49_v19 = vld [vmem:[#allocation2 + $0x48] sm:$0xff]  ;;  %v43_v22 = vld [vmem:[#allocation2 + $0x18] sm:$0xff]  ;;  %p569_p0 = pnand %p568_p13, %p562_p10 }
  0x24   :  { %433 = vmatpush3.msra.mxu0 %v68_v3  ;;  %501 = vmatpush3.msra.mxu1 %v68_v3  ;;  %v51_v23 = vld [vmem:[#allocation2 + $0x58] sm:$0xff]  ;;  %v44_v24 = vld [vmem:[#allocation2 + $0x20] sm:$0xff]  ;;  %v45_v26 = vld [vmem:[#allocation2 + $0x28] sm:$0xff] }
  0x25   :  { %434 = vmatprep.subr.mxu0 %v67_v4  ;;  %486 = vmatprep.subr.mxu1 %v67_v4  ;;  %v52_v25 = vld [vmem:[#allocation2 + $0x60] sm:$0xff]  ;;  %v53_v27 = vld [vmem:[#allocation2 + $0x68] sm:$0xff]  ;;  %v46_v28 = vld [vmem:[#allocation2 + $0x30] sm:$0xff] }
  0x26   :  { %435 = vmatpush3.msra.mxu0 %v67_v4  ;;  %502 = vmatpush3.msra.mxu1 %v67_v4  ;;  %v54_v29 = vld [vmem:[#allocation2 + $0x70] sm:$0xff]  ;;  %v47_v30 = vld [vmem:[#allocation2 + $0x38] sm:$0xff] }
  0x27   :  { %436 = vmatprep.subr.mxu0 %v66_v5  ;;  %487 = vmatprep.subr.mxu1 %v66_v5  ;;  %v55_v31 = vld [vmem:[#allocation2 + $0x78] sm:$0xff] }
  0x28   :  { %437 = vmatpush3.msra.mxu0 %v66_v5  ;;  %503 = vmatpush3.msra.mxu1 %v66_v5 }
  0x29   :  { %438 = vmatprep.subr.mxu0 %v65_v6  ;;  %488 = vmatprep.subr.mxu1 %v65_v6 }
  0x2a   :  { %439 = vmatpush3.msra.mxu0 %v65_v6  ;;  %504 = vmatpush3.msra.mxu1 %v65_v6 }
  0x2b   :  { %440 = vmatprep.subr.mxu0 %v64_v7  ;;  %489 = vmatprep.subr.mxu1 %v64_v7 }
  0x2c   :  { %441 = vmatpush3.msra.mxu0 %v64_v7  ;;  %505 = vmatpush3.msra.mxu1 %v64_v7 }
  0x2d   :  { %442 = vmatprep.subr.mxu0 %v63_v8  ;;  %490 = vmatprep.subr.mxu1 %v63_v8 }
  0x2e   :  { %443 = vmatpush3.msra.mxu0 %v63_v8  ;;  %506 = vmatpush3.msra.mxu1 %v63_v8 }
  0x2f   :  { %444 = vmatprep.subr.mxu0 %v62_v9  ;;  %491 = vmatprep.subr.mxu1 %v62_v9 }
  0x30   :  { %445 = vmatpush3.msra.mxu0 %v62_v9  ;;  %507 = vmatpush3.msra.mxu1 %v62_v9 }
  0x31   :  { %446 = vmatprep.subr.mxu0 %v61_v10  ;;  %492 = vmatprep.subr.mxu1 %v61_v10 }
  0x32   :  { %447 = vmatpush3.msra.mxu0 %v61_v10  ;;  %508 = vmatpush3.msra.mxu1 %v61_v10 }
  0x33   :  { %448 = vmatprep.subr.mxu0 %v60_v11  ;;  %493 = vmatprep.subr.mxu1 %v60_v11 }
  0x34   :  { %449 = vmatpush3.msra.mxu0 %v60_v11  ;;  %509 = vmatpush3.msra.mxu1 %v60_v11 }
  0x35   :  { %450 = vmatprep.subr.mxu0 %v59_v12  ;;  %494 = vmatprep.subr.mxu1 %v59_v12 }
  0x36   :  { %451 = vmatpush3.msra.mxu0 %v59_v12  ;;  %510 = vmatpush3.msra.mxu1 %v59_v12 }
  0x37   :  { %452 = vmatprep.subr.mxu0 %v58_v13  ;;  %495 = vmatprep.subr.mxu1 %v58_v13 }
  0x38   :  { %453 = vmatpush3.msra.mxu0 %v58_v13  ;;  %511 = vmatpush3.msra.mxu1 %v58_v13 }
  0x39   :  { %454 = vmatprep.subr.mxu0 %v57_v14  ;;  %496 = vmatprep.subr.mxu1 %v57_v14 }
  0x3a   :  { %455 = vmatpush3.msra.mxu0 %v57_v14  ;;  %512 = vmatpush3.msra.mxu1 %v57_v14 }
  0x3b   :  { %456 = vmatprep.subr.mxu0 %v56_v15  ;;  %497 = vmatprep.subr.mxu1 %v56_v15 }
  0x3c   :  { %457 = vmatpush3.msra.mxu0 %v56_v15  ;;  %513 = vmatpush3.msra.mxu1 %v56_v15 }
  0x3d   :  { %458 = vmatprep.mubr.f32.mxu0 %v40_v16  ;;  %470 = vmatprep.mubr.f32.mxu1 %v48_v17 }
  0x3e   :  { %459 = vmatmul.mubr.f32.vlgmr.msra.gmra.mxu0 %v41_v18  ;;  %471 = vmatmul.mubr.f32.vlgmr.msra.gmra.mxu1 %v49_v19 }
  0x3f   :  { %461 = vmatprep.mubr.f32.mxu0 %v42_v20  ;;  %473 = vmatprep.mubr.f32.mxu1 %v50_v21 }
  0x42   :  { %462 = vmatmul.mubr.f32.gmra.mxu0 %v43_v22  ;;  %474 = vmatmul.mubr.f32.gmra.mxu1 %v51_v23 }
  0x43   :  { %464 = vmatprep.mubr.f32.mxu0 %v44_v24  ;;  %476 = vmatprep.mubr.f32.mxu1 %v52_v25 }
  0x46   :  { %465 = vmatmul.mubr.f32.gmra.mxu0 %v45_v26  ;;  %477 = vmatmul.mubr.f32.gmra.mxu1 %v53_v27 }
  0x47   :  { %467 = vmatprep.mubr.f32.mxu0 %v46_v28  ;;  %479 = vmatprep.mubr.f32.mxu1 %v54_v29 }
  0x4a   :  { %468 = vmatmul.mubr.f32.gmra.mxu0 %v47_v30  ;;  %480 = vmatmul.mubr.f32.gmra.mxu1 %v55_v31 }
  0xfe   :  { %v460_v32 = vpop.f32.mrf.mxu0  ;;  %v472_v33 = vpop.f32.mrf.mxu1 }
 0x100   :  { %v138_v34 = vpop.f32.mrf.mxu0  ;;  %v178_v35 = vpop.f32.mrf.mxu1 }
 0x101   :  { %v350_v36 = vpack.c.bf16 %v460_v32, %v138_v34  ;;  %v370_v37 = vpack.c.bf16 %v472_v33, %v178_v35 }
 0x102   :  { %v463_v38 = vpop.f32.mrf.mxu0  ;;  %v475_v39 = vpop.f32.mrf.mxu1 }
 0x103   :  { %351 = vst [vmem:[#allocation7] sm:$0xff] %v350_v36   ;;  %390 = vst [vmem:[#allocation7 + $0x20] sm:$0xff] %v370_v37  }
 0x104   :  { %v148_v40 = vpop.f32.mrf.mxu0  ;;  %v188_v41 = vpop.f32.mrf.mxu1 }
 0x105   :  { %v355_v42 = vpack.c.bf16 %v463_v38, %v148_v40  ;;  %v375_v43 = vpack.c.bf16 %v475_v39, %v188_v41 }
 0x106   :  { %v466_v44 = vpop.f32.mrf.mxu0  ;;  %v478_v45 = vpop.f32.mrf.mxu1 }
 0x107   :  { %387 = vst [vmem:[#allocation7 + $0x8] sm:$0xff] %v355_v42   ;;  %391 = vst [vmem:[#allocation7 + $0x28] sm:$0xff] %v375_v43  }
 0x108   :  { %v158_v46 = vpop.f32.mrf.mxu0  ;;  %v198_v47 = vpop.f32.mrf.mxu1 }
 0x109   :  { %v360_v48 = vpack.c.bf16 %v466_v44, %v158_v46  ;;  %v380_v49 = vpack.c.bf16 %v478_v45, %v198_v47 }
 0x10a   :  { %v469_v50 = vpop.f32.mrf.mxu0  ;;  %v481_v51 = vpop.f32.mrf.mxu1 }
 0x10b   :  { %388 = vst [vmem:[#allocation7 + $0x10] sm:$0xff] %v360_v48   ;;  %392 = vst [vmem:[#allocation7 + $0x30] sm:$0xff] %v380_v49  }
 0x10c   :  { %v168_v52 = vpop.f32.mrf.mxu0  ;;  %v208_v53 = vpop.f32.mrf.mxu1 }
 0x10d   :  { %v365_v54 = vpack.c.bf16 %v469_v50, %v168_v52  ;;  %v385_v55 = vpack.c.bf16 %v481_v51, %v208_v53 }
 0x10f   :  { %389 = vst [vmem:[#allocation7 + $0x18] sm:$0xff] %v365_v54   ;;  %393 = vst [vmem:[#allocation7 + $0x38] sm:$0xff] %v385_v55  }
 0x110   :  { %572 = shalt.err (!%p569_p0)
}
 0x111   :  { %s592_s22 = smov 64   ;;  %s593_s23 = smov 4  }
 0x112   :  { %308 = dma.vmem_to_hbm [thread:$0]  %s303_s1, 1024, %s620_s2, [#allocation4], %s592_s22, %s592_s22, %s593_s23  }
 0x113   :  { %585 = dma.done.wait [#allocation4], 1024  }
 0x114   :  { %586 = vsyncadd [#allocation4], 4294966272 }
 0x115   :  { %312 = vsyncpa [#allocation3], 1 }
 0x116   :  { %313 = vsyncpa [#allocation6], 1 }
 0x117   :  { %314 = vsyncpa [#allocation4], 1 }

</bundles_post_ra>
